<compile_context>
chip_gen: v6e
topology: v6e:2x2x1
jax: 0.10.0
libtpu: 0.0.40
codegen_flags: <defaults>
</compile_context>

<pallas_src>
import jax
import jax.numpy as jnp
from jax.experimental import pallas as pl
from jax.experimental.pallas import tpu as pltpu

_LANES = 128


def _copy_kernel(x_ref, o_ref):
    # Whole-tile pass-through (identity).
    o_ref[...] = x_ref[...]


def _round_up(a: int, b: int) -> int:
    return -(-a // b) * b


def _chip_tuning():
    """Return (target block bytes, optional vmem_limit_bytes) for this TPU generation."""
    block_bytes, vmem_limit = 2 << 20, None          # safe on v5e (16 MiB scoped-VMEM default)
    try:
        vmem = getattr(pltpu.get_tpu_info(), "vmem_capacity_bytes", None)
    except Exception:                                # defensive: tuning must never break compile
        vmem = None
    if vmem is not None and vmem <= (64 << 20):
        # v7x-class: 64 MiB VMEM/TC but ~3.2 TB/s HBM -> bigger blocks amortize
        # the ~0.35 us per-grid-step overhead; 8 MiB * (in+out) * 2 buffers = 32 MiB.
        block_bytes, vmem_limit = 8 << 20, 48 << 20
    return block_bytes, vmem_limit


def _pick_tile_rows(rows: int, sub: int, row_bytes: int, target_bytes: int) -> int:
    """Rows per block: sub-aligned, <= target bytes, >= 2 grid steps when possible."""
    max_tile = max(sub, (target_bytes // max(row_bytes, 1)) // sub * sub)
    if rows <= max_tile:
        half = _round_up(pl.cdiv(rows, 2), sub)
        if rows > sub and half < rows:
            return half                              # >= 2 grid steps (v7x has 2 TCs)
        return rows                                  # full extent: always layout-legal
    return max_tile


@jax.jit
def biggan_forward(x: jax.Array) -> jax.Array:
    """Identity forward of the (stub) BigGAN module via a Pallas TPU kernel."""
    # TODO(synk): reference forward body is `return output` with `output`
    #             undefined (NameError); no real BigGAN compute exists to
    #             translate, so this is an assumed identity pass-through.
    orig_shape = x.shape
    total = x.size
    if total == 0:
        return x

    itemsize = x.dtype.itemsize
    sub = 8 * max(1, 4 // itemsize)                  # packed-dtype sublane multiple

    if total % _LANES == 0:
        # Fast path: lane-dense (rows, 128) view -> unmasked full-vreg vld/vst.
        cols = _LANES
    else:
        # Fallback: keep the trailing dim full-extent (satisfies the (8,128)
        # rule without any padding/slice HBM passes; stores may be masked).
        cols = orig_shape[-1] if (x.ndim >= 1 and orig_shape[-1] > 0) else total
    rows = total // cols
    x2d = x.reshape(rows, cols)

    block_bytes, vmem_limit = _chip_tuning()
    tile_rows = _pick_tile_rows(rows, sub, cols * itemsize, block_bytes)
    grid = (pl.cdiv(rows, tile_rows),)               # partial last block is masked by Pallas

    out2d = pl.pallas_call(
        _copy_kernel,
        out_shape=jax.ShapeDtypeStruct((rows, cols), x.dtype),
        grid=grid,
        in_specs=[pl.BlockSpec((tile_rows, cols), lambda i: (i, 0))],
        out_specs=pl.BlockSpec((tile_rows, cols), lambda i: (i, 0)),
        compiler_params=pltpu.CompilerParams(
            dimension_semantics=("parallel",),
            vmem_limit_bytes=vmem_limit,
        ),
        cost_estimate=pl.CostEstimate(
            flops=0,
            transcendentals=0,
            bytes_accessed=2 * total * itemsize,
        ),
    )(x2d)

    return out2d.reshape(orig_shape)


if __name__ == "__main__":
    key = jax.random.PRNGKey(0)
    # Small NCHW input consistent with an image-generation module.
    x = jax.random.normal(key, (2, 4, 16, 16), dtype=jnp.float32)

    y = biggan_forward(x)
    jax.block_until_ready(y)

    assert y.shape == x.shape and y.dtype == x.dtype
    assert bool(jnp.allclose(y, x))
    print("KERNEL_OK")
</pallas_src>

<mosaic_0001>
module attributes {stable_mosaic.version = 11 : i64} {
  func.func @_copy_kernel(%arg0: i32, %arg1: memref<8x128xf32, #tpu.memory_space<vmem>>, %arg2: memref<8x128xf32, #tpu.memory_space<vmem>>) attributes {dimension_semantics = [#tpu.dimension_semantics<parallel>], iteration_bounds = array<i64: 2>, scalar_prefetch = 0 : i64, scratch_operands = 0 : i64, tpu.core_type = #tpu.core_type<tc>, window_params = [{transform_indices = @transform_0, window_bounds = array<i64: 8, 128>}, {transform_indices = @transform_1, window_bounds = array<i64: 8, 128>}]} {
    %c0 = arith.constant 0 : index
    %c0_0 = arith.constant 0 : index
    %0 = vector.load %arg1[%c0, %c0_0] : memref<8x128xf32, #tpu.memory_space<vmem>>, vector<8x128xf32>
    %c0_1 = arith.constant 0 : index
    %c0_2 = arith.constant 0 : index
    %1 = vector.load %arg2[%c0_1, %c0_2] : memref<8x128xf32, #tpu.memory_space<vmem>>, vector<8x128xf32>
    tpu.vector_store %arg2[%c0_1, %c0_2], %0 {strides = array<i32>} : memref<8x128xf32, #tpu.memory_space<vmem>>, vector<8x128xf32>,
    return
  }
  func.func @transform_0(%arg0: i32) -> (i32, i32) {
    %c0_i32 = arith.constant 0 : i32
    %c0_i32_0 = arith.constant 0 : i32
    return %arg0, %c0_i32 : i32, i32
  }
  func.func @transform_1(%arg0: i32) -> (i32, i32) {
    %c0_i32 = arith.constant 0 : i32
    %c0_i32_0 = arith.constant 0 : i32
    return %arg0, %c0_i32 : i32, i32
  }
}

</mosaic_0001>

<bundles_post_ra>
// kernel: biggan_forward.1
= control target key start
LH: loop header
LB: loop body
LE: loop exit
PB: predicated region body
PF: predicated region fallthrough
CT: control target
= control target key end

     0   :  { %s188_s6 = smov 0   ;;  %s208_s0 = inlined_call_operand.vmem [shape: f32[16,128], index: 0, kind: input, shape index: {}]   ;;  %s209_s1 = inlined_call_operand.vmem [shape: f32[16,128], index: 1, kind: output, shape index: {}]  }
   0x1 LB: > { %s167_s7 = sadd.s32 4294967295, %s190_s6   ;;  %p171_p0 = scmp.ge.s32.totalorder %s190_s6, 1  ;;  %s190_s6 = sphi %s188_s6, %s11_s6  }
   0x2   : > { %p86_p1 = scmp.lt.s32.totalorder %s190_s6, 3 }
   0x4   : > { %p87_p2 = pnand %p171_p0, %p86_p1 }
   0x5   : > { %p104_p3 = scmp.lt.s32.totalorder (!%p87_p2), %s167_s7, 1 }
   0x6   : > { %90 = sbr.rel (%p87_p2) target bundleno = 16 (0x10), region = 24 }
   0xb   : > { %s211_s7 = smov (!%p104_p3, %s167_s7), 1 }
   0xc   : > { %s172_s8 = sshll.u32 %s211_s7, 3 }
   0xd   : > { %s107_s11 = scalar_lea.vmem %s208_s0, %s172_s8  ;;  %s111_s14 = scalar_lea.vmem %s209_s1, %s172_s8 }
   0xe   : > { %v112_v0 = vld [vmem:[%s107_s11] sm:$0xff] }
   0xf   : > { %113 = vst [vmem:[%s111_s14] sm:$0xff] %v112_v0 }
  0x10 PF: > { %s11_s6 = sadd.s32 1, %s190_s6  }
  0x11   : > { %p8_p4 = scmp.ge.s32.totalorder %s11_s6, 4  }
  0x13   :  { %10 = sbr.rel (!%p8_p4) target bundleno = 1 (0x1), region = 54 }

</bundles_post_ra>
